<compile_context>
chip_gen: v7x
topology: tpu7x:2x2x1
jax: 0.10.0
libtpu: 0.0.40
codegen_flags: <defaults>
</compile_context>

<pallas_src>
import jax
import jax.numpy as jnp
from jax import lax
from jax.experimental import pallas as pl
from jax.experimental.pallas import tpu as pltpu

_LANE = 128
_SMALL_INPUT_ELEMS = 1 << 15  # below this, plain XLA beats pallas_call fixed cost


def _round_up(a, b):
    return ((a + b - 1) // b) * b


def _pca_stats_kernel(x_ref, sum_ref, gram_ref):
    """Accumulate per-split column-sum and Gram matrix across the row-tile axis."""
    @pl.when(pl.program_id(1) == 0)
    def _():
        sum_ref[...] = jnp.zeros_like(sum_ref)
        gram_ref[...] = jnp.zeros_like(gram_ref)

    xt = x_ref[...]                                   # (tile_rows, Dp), native dtype
    # Column sum: cross-sublane reduce on the XLU slot; cheap next to the HBM stream.
    sum_ref[...] += jnp.sum(xt.astype(jnp.float32), axis=0, keepdims=True)
    # X^T X without materializing a transpose: contract axis 0 with axis 0 so
    # Mosaic drives the MXU with a transposed LHS directly; f32 accumulation.
    gram_ref[...] += lax.dot_general(
        xt, xt,
        dimension_numbers=(((0,), (0,)), ((), ())),
        preferred_element_type=jnp.float32)


def pca_statistics(x, *, tile_t=1024, n_splits=2, use_pallas=None):
    """Return (x0, x1, x2) = (count, sum_t x_t, sum_t x_t x_t^T) via Pallas."""
    T, D = x.shape
    x0 = jnp.float32(T)

    if use_pallas is None:
        use_pallas = T * D >= _SMALL_INPUT_ELEMS
    if not use_pallas:
        # Small-input fallback: fused XLA is faster than pallas_call fixed cost.
        xf = x.astype(jnp.float32)
        return x0, jnp.sum(xf, axis=0), jnp.dot(xf.T, xf, preferred_element_type=jnp.float32)

    pack = max(1, _LANE // D)      # frames packed per row (lane-dense when D | 128)
    Dp = pack * D                  # packed lane width

    packed_rows = pl.cdiv(T, pack)
    rows_per_split = _round_up(pl.cdiv(packed_rows, n_splits), 8)
    tile_rows = min(tile_t, rows_per_split)
    rows_per_split = _round_up(rows_per_split, tile_rows)
    T_pad = rows_per_split * n_splits * pack

    if T_pad != T:
        # Zero rows contribute nothing to the sum or Gram; true count is T.
        x = jnp.concatenate([x, jnp.zeros((T_pad - T, D), x.dtype)], axis=0)
    y = x.reshape(n_splits, rows_per_split, Dp)   # free, contiguous reshape

    sum_out, gram_out = pl.pallas_call(
        _pca_stats_kernel,
        out_shape=(
            jax.ShapeDtypeStruct((n_splits, 1, Dp), jnp.float32),
            jax.ShapeDtypeStruct((n_splits, Dp, Dp), jnp.float32),
        ),
        grid_spec=pltpu.PrefetchScalarGridSpec(
            num_scalar_prefetch=0,
            grid=(n_splits, rows_per_split // tile_rows),
            in_specs=[pl.BlockSpec((None, tile_rows, Dp), lambda c, i: (c, i, 0))],
            out_specs=(
                pl.BlockSpec((None, 1, Dp), lambda c, i: (c, 0, 0)),     # resident acc
                pl.BlockSpec((None, Dp, Dp), lambda c, i: (c, 0, 0)),    # resident acc
            ),
        ),
        compiler_params=pltpu.CompilerParams(
            dimension_semantics=("parallel", "arbitrary"),
            vmem_limit_bytes=48 << 20,   # fits v5e/v6e/v7x; actual use is ~1-2 MiB
        ),
    )(y)

    # Tiny JAX tail: combine per-core partials and unpack the packed layout.
    gram = jnp.sum(gram_out, axis=0)          # (Dp, Dp)
    colsum = jnp.sum(sum_out, axis=0)[0]      # (Dp,)

    if pack > 1:
        g4 = gram.reshape(pack, D, pack, D)
        x2 = jnp.diagonal(g4, axis1=0, axis2=2).sum(-1)   # sum of diagonal DxD blocks
        x1 = colsum.reshape(pack, D).sum(0)
    else:
        x2 = gram[:D, :D]
        x1 = colsum[:D]
    return x0, x1, x2


class PrincipalComponentAnalysisPallas:
    """JAX/Pallas port of diffsptk.PrincipalComponentAnalysis (forward only)."""

    def __init__(self, order, n_comp, *, cov_type="sample", sort="descending"):
        assert 1 <= n_comp <= order + 1
        assert sort in ("ascending", "descending")
        self.order = order
        self.n_comp = n_comp
        self.sort = sort
        self.cov_type = cov_type
        D = order + 1
        # Deterministic buffer init mirroring the torch module.
        self.s = jnp.zeros((n_comp,), jnp.float32)
        self.V = jnp.eye(n_comp, D, dtype=jnp.float32)
        self.m = jnp.zeros((D,), jnp.float32)

    def _cov(self, x0, x1, x2):
        # NOTE: c = x2/x0 - outer(x1,x1)/x0^2 in f32 can cancel catastrophically
        # for data whose mean >> std; acceptable for typical PCA use.
        c = x2 / x0 - jnp.outer(x1, x1) / (x0 * x0)   # sample covariance
        if self.cov_type == "sample":
            return c
        elif self.cov_type == "unbiased":
            return c * (x0 / (x0 - 1.0))
        elif self.cov_type == "correlation":
            v = jnp.sqrt(jnp.diag(c))
            return c / jnp.outer(v, v)
        else:
            raise ValueError(f"cov_type {self.cov_type} is not supported.")

    def __call__(self, x):
        """x: (T, M+1) float array.  Returns (s, V, m)."""
        T = x.shape[0]
        if T <= self.n_comp:
            raise RuntimeError("Number of data samples is too small.")

        # Hot path (streaming reductions / Gram matmul) in Pallas:
        x0, x1, x2 = pca_statistics(x)

        # Small O(D^2)/O(D^3) tail in plain JAX.
        # TODO(synk): jnp.linalg.eigh has no Pallas TPU equivalent; kept as glue.
        m = x1 / x0
        c = self._cov(x0, x1, x2)
        val, vec = jnp.linalg.eigh(c)          # ascending eigenvalues
        val = val[-self.n_comp:]
        vec = vec[:, -self.n_comp:]
        if self.sort == "descending":
            val = val[::-1]
            vec = vec[:, ::-1]

        self.s = val
        self.V = vec.T                          # (K, M+1)
        self.m = m
        return self.s, self.V, self.m

    def transform(self, x):
        V = self.V.T[:, ::-1] if self.sort == "ascending" else self.V.T
        return jnp.matmul(x - self.m, V)


if __name__ == "__main__":
    order = 7            # M  -> vector dim D = M+1 = 8
    n_comp = 4           # K
    T = 8192             # number of frames (big enough to take the Pallas path)

    key = jax.random.PRNGKey(0)
    x = jax.random.normal(key, (T, order + 1), dtype=jnp.float32)

    pca = PrincipalComponentAnalysisPallas(order, n_comp,
                                           cov_type="sample", sort="descending")
    s, V, m = pca(x)
    jax.block_until_ready((s, V, m))

    # Sanity check against a pure-JAX reference of the same math.
    xc = x - jnp.mean(x, axis=0)
    c_ref = (xc.T @ xc) / T
    val_ref, _ = jnp.linalg.eigh(c_ref)
    s_ref = val_ref[-n_comp:][::-1]
    m_ref = jnp.mean(x, axis=0)
    assert jnp.allclose(s, s_ref, rtol=1e-3, atol=1e-3), (s, s_ref)
    assert jnp.allclose(m, m_ref, atol=1e-4)
    assert s.shape == (n_comp,) and V.shape == (n_comp, order + 1) and m.shape == (order + 1,)

    # Exercise transform() once to make sure shapes line up like the torch module.
    y = pca.transform(x)
    assert y.shape == (T, n_comp)
    jax.block_until_ready(y)

    # Ragged-T path through the Pallas kernel (exercises zero-row padding).
    T2 = 5000
    xr = jax.random.normal(jax.random.PRNGKey(1), (T2, order + 1), dtype=jnp.float32)
    x0_p, x1_p, x2_p = pca_statistics(xr, use_pallas=True)
    xrf = xr.astype(jnp.float32)
    assert float(x0_p) == T2
    assert jnp.allclose(x1_p, xrf.sum(0), rtol=1e-4, atol=1e-2)
    assert jnp.allclose(x2_p, xrf.T @ xrf, rtol=1e-4, atol=1e-1)

    # Small-input fallback path (plain XLA).
    xs = jax.random.normal(jax.random.PRNGKey(2), (64, order + 1), dtype=jnp.float32)
    pca_small = PrincipalComponentAnalysisPallas(order, n_comp)
    s2, V2, m2 = pca_small(xs)
    jax.block_until_ready((s2, V2, m2))

    print("KERNEL_OK")
</pallas_src>

<mosaic_0001>
module attributes {stable_mosaic.version = 11 : i64} {
  func.func @_pca_stats_kernel(%arg0: i32, %arg1: i32, %arg2: memref<1x256x128xf32, #tpu.memory_space<vmem>>, %arg3: memref<1x1x128xf32, #tpu.memory_space<vmem>>, %arg4: memref<1x128x128xf32, #tpu.memory_space<vmem>>) attributes {dimension_semantics = [#tpu.dimension_semantics<parallel>, #tpu.dimension_semantics<arbitrary>], iteration_bounds = array<i64: 2, 1>, scalar_prefetch = 0 : i64, scratch_operands = 0 : i64, tpu.core_type = #tpu.core_type<tc>, window_params = [{transform_indices = @transform_0, window_bounds = array<i64: 1, 256, 128>}, {transform_indices = @transform_1, window_bounds = array<i64: 1, 1, 128>}, {transform_indices = @transform_2, window_bounds = array<i64: 1, 128, 128>}]} {
    %c0_i32 = arith.constant 0 : i32
    %0 = arith.cmpi eq, %arg1, %c0_i32 : i32
    %1 = arith.extui %0 : i1 to i32
    %c0_i32_0 = arith.constant 0 : i32
    %2 = arith.cmpi ne, %1, %c0_i32_0 : i32
    scf.if %2 {
      %cst_16 = arith.constant 0.000000e+00 : f32
      %20 = vector.broadcast %cst_16 : f32 to vector<1x128xf32>
      %c0_17 = arith.constant 0 : index
      %c0_18 = arith.constant 0 : index
      %c0_19 = arith.constant 0 : index
      %21 = vector.load %arg3[%c0_17, %c0_18, %c0_19] : memref<1x1x128xf32, #tpu.memory_space<vmem>>, vector<1x1x128xf32>
      %22 = vector.shape_cast %21 : vector<1x1x128xf32> to vector<1x128xf32>
      %23 = vector.shape_cast %20 : vector<1x128xf32> to vector<1x1x128xf32>
      tpu.vector_store %arg3[%c0_17, %c0_18, %c0_19], %23 {strides = array<i32>} : memref<1x1x128xf32, #tpu.memory_space<vmem>>, vector<1x1x128xf32>,
      %cst_20 = arith.constant 0.000000e+00 : f32
      %24 = vector.broadcast %cst_20 : f32 to vector<128x128xf32>
      %c0_21 = arith.constant 0 : index
      %c0_22 = arith.constant 0 : index
      %c0_23 = arith.constant 0 : index
      %25 = vector.load %arg4[%c0_21, %c0_22, %c0_23] : memref<1x128x128xf32, #tpu.memory_space<vmem>>, vector<1x128x128xf32>
      %26 = vector.shape_cast %25 : vector<1x128x128xf32> to vector<128x128xf32>
      %27 = vector.shape_cast %24 : vector<128x128xf32> to vector<1x128x128xf32>
      tpu.vector_store %arg4[%c0_21, %c0_22, %c0_23], %27 {strides = array<i32>} : memref<1x128x128xf32, #tpu.memory_space<vmem>>, vector<1x128x128xf32>,
    } else {
    }
    %c0 = arith.constant 0 : index
    %c0_1 = arith.constant 0 : index
    %c0_2 = arith.constant 0 : index
    %3 = vector.load %arg2[%c0, %c0_1, %c0_2] : memref<1x256x128xf32, #tpu.memory_space<vmem>>, vector<1x256x128xf32>
    %4 = vector.shape_cast %3 : vector<1x256x128xf32> to vector<256x128xf32>
    %c0_3 = arith.constant 0 : index
    %c0_4 = arith.constant 0 : index
    %c0_5 = arith.constant 0 : index
    %5 = vector.load %arg3[%c0_3, %c0_4, %c0_5] : memref<1x1x128xf32, #tpu.memory_space<vmem>>, vector<1x1x128xf32>
    %6 = vector.shape_cast %5 : vector<1x1x128xf32> to vector<1x128xf32>
    %cst = arith.constant dense<0.000000e+00> : vector<128xf32>
    %7 = vector.multi_reduction <add>, %4, %cst [0] : vector<256x128xf32> to vector<128xf32>
    %8 = vector.shape_cast %7 : vector<128xf32> to vector<1x128xf32>
    %9 = arith.addf %6, %8 : vector<1x128xf32>
    %c0_6 = arith.constant 0 : index
    %c0_7 = arith.constant 0 : index
    %c0_8 = arith.constant 0 : index
    %10 = vector.load %arg3[%c0_6, %c0_7, %c0_8] : memref<1x1x128xf32, #tpu.memory_space<vmem>>, vector<1x1x128xf32>
    %11 = vector.shape_cast %10 : vector<1x1x128xf32> to vector<1x128xf32>
    %12 = vector.shape_cast %9 : vector<1x128xf32> to vector<1x1x128xf32>
    tpu.vector_store %arg3[%c0_6, %c0_7, %c0_8], %12 {strides = array<i32>} : memref<1x1x128xf32, #tpu.memory_space<vmem>>, vector<1x1x128xf32>,
    %c0_9 = arith.constant 0 : index
    %c0_10 = arith.constant 0 : index
    %c0_11 = arith.constant 0 : index
    %13 = vector.load %arg4[%c0_9, %c0_10, %c0_11] : memref<1x128x128xf32, #tpu.memory_space<vmem>>, vector<1x128x128xf32>
    %14 = vector.shape_cast %13 : vector<1x128x128xf32> to vector<128x128xf32>
    %cst_12 = arith.constant dense<0.000000e+00> : vector<128x128xf32>
    %15 = tpu.matmul %4, %4, %cst_12 {dimension_numbers = #tpu.dot_dimension_numbers<[0], [0], [1], [1], [0, 1, 1, 1], [], []>} : vector<256x128xf32>, vector<256x128xf32>, vector<128x128xf32> -> vector<128x128xf32>
    %16 = arith.addf %14, %15 : vector<128x128xf32>
    %c0_13 = arith.constant 0 : index
    %c0_14 = arith.constant 0 : index
    %c0_15 = arith.constant 0 : index
    %17 = vector.load %arg4[%c0_13, %c0_14, %c0_15] : memref<1x128x128xf32, #tpu.memory_space<vmem>>, vector<1x128x128xf32>
    %18 = vector.shape_cast %17 : vector<1x128x128xf32> to vector<128x128xf32>
    %19 = vector.shape_cast %16 : vector<128x128xf32> to vector<1x128x128xf32>
    tpu.vector_store %arg4[%c0_13, %c0_14, %c0_15], %19 {strides = array<i32>} : memref<1x128x128xf32, #tpu.memory_space<vmem>>, vector<1x128x128xf32>,
    return
  }
  func.func @transform_0(%arg0: i32, %arg1: i32) -> (i32, i32, i32) {
    %c0_i32 = arith.constant 0 : i32
    %c0_i32_0 = arith.constant 0 : i32
    return %arg0, %arg1, %c0_i32 : i32, i32, i32
  }
  func.func @transform_1(%arg0: i32, %arg1: i32) -> (i32, i32, i32) {
    %c0_i32 = arith.constant 0 : i32
    %c0_i32_0 = arith.constant 0 : i32
    %c0_i32_1 = arith.constant 0 : i32
    return %arg0, %c0_i32, %c0_i32_0 : i32, i32, i32
  }
  func.func @transform_2(%arg0: i32, %arg1: i32) -> (i32, i32, i32) {
    %c0_i32 = arith.constant 0 : i32
    %c0_i32_0 = arith.constant 0 : i32
    %c0_i32_1 = arith.constant 0 : i32
    return %arg0, %c0_i32, %c0_i32_0 : i32, i32, i32
  }
}

</mosaic_0001>

<bundles_post_ra>
// kernel: tpu_custom_call.1
= control target key start
LH: loop header
LB: loop body
LE: loop exit
PB: predicated region body
PF: predicated region fallthrough
CT: control target
= control target key end

     0   :  { %8 = vsyncpa [#allocation3], 0  ;;  %s1509_s0 = inlined_call_operand.hbm [shape: f32[2,256,128], index: 0, kind: input, shape index: {}]   ;;  %s1510_s1 = inlined_call_operand.hbm [shape: f32[2,1,128], index: 1, kind: output, shape index: {0}]   ;;  %s1511_s2 = inlined_call_operand.hbm [shape: f32[2,128,128], index: 2, kind: output, shape index: {1}]  }
   0x1   :  { %10 = vsyncpa [#allocation3 + $0x1], 0 }
   0x2   :  { %11 = vsyncpa [#allocation4], 0 }
   0x3   :  { %13 = vsyncpa [#allocation4 + $0x1], 0 }
   0x4   :  { %14 = vsyncpa [#allocation7], 0 }
   0x5   :  { %16 = vsyncpa [#allocation7 + $0x1], 0  ;;  %s1181_s9 = smov 0   ;;  %s1183_s10 = smov 0  }
   0x6   :  { %s1185_s11 = smov 0   ;;  %s1187_s12 = smov 0  }
   0x7   :  { %s1189_s13 = smov 0   ;;  %s1191_s14 = smov 0  }
   0x8 LB: > { %s682_s15 = sadd.s32 4294967295, %s1156_s14   ;;  %s683_s16 = sadd.s32 4294967294, %s1156_s14   ;;  %s1156_s14 = sphi %s1191_s14, %s22_s14   ;;  %s1152_s13 = sphi %s1189_s13, %s1526_s13   ;;  %s1148_s12 = sphi %s1187_s12, %s1525_s12   ;;  %s1144_s11 = sphi %s1185_s11, %s1524_s11   ;;  %s1140_s10 = sphi %s1183_s10, %s1523_s10   ;;  %s1136_s9 = sphi %s1181_s9, %s1522_s9  }
   0x9   : > { %s34_s17 = sadd.s32 1, %s1152_s13  ;;  %s43_s18 = sadd.s32 1, %s1144_s11 }
   0xa   : > { %p36_p0 = scmp.ge.s32.totalorder %s34_s17, 2  ;;  %p50_p1 = scmp.ne.s32.totalorder %s1144_s11, %s1140_s10 }
   0xb   : > { %p51_p2 = scmp.eq.s32.totalorder %s1156_s14, 0  ;;  %p56_p3 = scmp.ne.s32.totalorder %s1140_s10, %s1136_s9 }
   0xc   : > { %s1528_s17 = smov (%p36_p0, %s34_s17), 0  ;;  %p57_p5 = scmp.eq.s32.totalorder %s682_s15, 0 }
   0xd   : > { %p1222_p4 = por %p51_p2, %p50_p1  ;;  %s38_s20 = ssub.s32 %s1152_s13, %s1528_s17 }
   0xe   : > { %p80_p6 = scmp.eq.s32.totalorder %s682_s15, 1  ;;  %p41_p7 = scmp.eq.s32.totalorder %s38_s20, 0 }
   0xf   : > { %p1228_p8 = por %p57_p5, %p56_p3  ;;  %p86_p10 = scmp.eq.s32.totalorder %s683_s16, 1 }
  0x10   : > { %p1232_p9 = por %p80_p6, %p50_p1  ;;  %p845_p13 = scmp.lt.s32.totalorder %s1156_s14, 2 }
  0x11   : > { %s1237_s23 = scalar_select %p41_p7, %s1144_s11, %s43_s18  }
  0x12   : > { %s1515_s22 = scalar_select %p1232_p9, 1, 0 }
  0x13   : > { %p1239_p11 = por %p86_p10, %p56_p3  ;;  %s132_s25 = sand.u32 1, %s1144_s11  }
  0x14   : > { %s686_s26 = sshll.u32 %s132_s25, 8  ;;  %s698_s27 = sshll.u32 %s1152_s13, 12 }
  0x15   : > { %s1516_s24 = scalar_select %p1239_p11, 1, 0 }
  0x16   : > { %s1250_s30 = scalar_lea.hbm %s1509_s0, %s698_s27  ;;  %s136_s3 = scalar_lea.vmem [#allocation2], %s686_s26 }
  0x17   : > { %s145_s4 = sshll.u32 %s136_s3, 4  ;;  %p1256_p0 = pnand %p845_p13, %p1222_p4  ;;  %s1252_s4 = int_to_ptr.vmem [resolvable:$true] %s145_s4 }
  0x18   : > { %s1261_s6 = scalar_lea.sflag [#allocation3], %s132_s25  ;;  %s1012_s7 = scalar_lea.hbm %s1250_s30, 4096 }
  0x19   : > { %p1013_p2 = scmp.ne.s32.totalorder %s1250_s30, %s1012_s7  ;;  %p1014_p3 = pneg %p1256_p0 }
  0x1a   : > { %s1017_s16 = scalar_lea.hbm %s1509_s0, 8192  ;;  %p1018_p4 = scmp.lt.u32.totalorder %s1250_s30, %s1509_s0 }
  0x1b   : > { %p1015_p5 = pnand %p1014_p3, %p1013_p2  ;;  %p1019_p7 = scmp.lt.u32.totalorder %s1017_s16, %s1012_s7 }
  0x1c   : > { %p1021_p13 = scmp.lt.u32.totalorder %s1012_s7, %s1250_s30 }
  0x1d   : > { %p1016_p6 = pneg %p1015_p5  ;;  %p1020_p10 = por %p1019_p7, %p1018_p4 }
  0x1f   : > { %p1022_p12 = por %p1021_p13, %p1020_p10 }
  0x21   : > { %p1023_p1 = pnand %p1022_p12, %p1016_p6 }
  0x23   : > { %1026 = shalt.err (!%p1023_p1)
}
  0x24   : > { %s1027_s20 = scalar_lea.vmem %s1252_s4, 4096  ;;  %s1158_s25 = smov [#allocation2]  }
  0x25   : > { %p1028_p2 = scmp.ne.s32.totalorder %s1252_s4, %s1027_s20  ;;  %s1032_s26 = sshll.u32 %s1158_s25, 4  ;;  %s1033_s26 = int_to_ptr.vmem [resolvable:$false] %s1032_s26 }
  0x26   : > { %s1034_s27 = scalar_lea.vmem %s1033_s26, 8192  ;;  %p1035_p9 = scmp.lt.s32.totalorder %s1252_s4, %s1033_s26 }
  0x27   : > { %p1030_p5 = pnand %p1028_p2, %p1014_p3  ;;  %p1036_p4 = scmp.lt.s32.totalorder %s1034_s27, %s1027_s20 }
  0x29   : > { %p1031_p11 = pneg %p1030_p5  ;;  %p1037_p7 = por %p1036_p4, %p1035_p9 }
  0x2b   : > { %p1038_p10 = pnand %p1037_p7, %p1031_p11 }
  0x2d   : > { %1041 = shalt.err (!%p1038_p10)
}
  0x2e   : > { %s1159_s28 = smov 128   ;;  %s1160_s29 = smov 8  }
  0x2f   : > { %837 = dma.hbm_to_vmem [thread:$0]  (!%p1256_p0), %s1250_s30, 4096, %s1252_s4, %s1261_s6, %s1159_s28, %s1159_s28, %s1160_s29  }
  0x30   : > { %p153_p12 = scmp.lt.s32.totalorder %s1156_s14, 3  ;;  %p1518_p1 = scmp.ge.s32.totalorder %s1156_s14, 1 }
  0x32   : > { %p154_p3 = pnand %p1518_p1, %p153_p12 }
  0x33   : > { %s1293_s3 = sand.u32 (!%p154_p3), 1, %s1140_s10  }
  0x34   : > { %157 = sbr.rel (%p154_p3) target bundleno = 486 (0x1e6), region = 24  ;;  %s690_s7 = sshll.u32 (!%p154_p3), %s1293_s3, 8 }
  0x35   : > { %s160_s8 = scalar_lea.sflag (!%p154_p3), [#allocation3], %s1293_s3  ;;  %s1297_s15 = scalar_lea.vmem (!%p154_p3), [#allocation2], %s690_s7 }
  0x3b   : > { %1123 = dma.done.wait (%p1228_p8), %s160_s8, 4096  }
  0x3c   : > { %1125 = vsyncadd (%p1228_p8), %s160_s8, 4294963200  ;;  %v210_v0 = vld [vmem:[%s1297_s15] sm:$0xff]  ;;  %v211_v2 = vld [vmem:[%s1297_s15 + $0x8] sm:$0xff]  ;;  %s180_s21 = scalar_lea.vmem [#allocation5], %s1293_s3  ;;  %s693_s30 = sshll.u32 %s1148_s12, 4 }
  0x3d   : > { %v1305_v1 = vld [vmem:[%s1297_s15 + $0x80] sm:$0xff]  ;;  %v1310_v4 = vld [vmem:[%s1297_s15 + $0x88] sm:$0xff]  ;;  %v243_v5 = vadd.f32 %v211_v2, %v210_v0  ;;  %v782_v6 = vpack.c.bf16 %v211_v2, %v210_v0  ;;  %v212_v7 = vld [vmem:[%s1297_s15 + $0x10] sm:$0xff]  ;;  %s557_s4 = sshll.u32 %s180_s21, 4  ;;  %s1414_s16 = scalar_lea.hbm %s1510_s1, %s693_s30  ;;  %s558_s4 = int_to_ptr.vmem [resolvable:$true] %s557_s4 }
  0x3e   : > { %v900_v3 = vpack.i.bf16 %v210_v0, %v1305_v1  ;;  %v1314_v8 = vld [vmem:[%s1297_s15 + $0x90] sm:$0xff]  ;;  %v1317_v9 = vld [vmem:[%s1297_s15 + $0x98] sm:$0xff]  ;;  %v780_v10 = vpack.c.bf16 %v1310_v4, %v1305_v1  ;;  %v902_v11 = vpack.i.bf16 %v211_v2, %v1310_v4  ;;  %v1326_v16 = vld [vmem:[%s1297_s15 + $0xa0] sm:$0xff]  ;;  %s540_s18 = scalar_lea.sflag [#allocation4], %s1293_s3  ;;  %s1042_s19 = scalar_lea.vmem %s558_s4, 16 }
  0x3f   : > { %v244_v12 = vadd.f32 %v243_v5, %v212_v7  ;;  %v784_v13 = vpack.c.bf16 %v1317_v9, %v1314_v8  ;;  %v213_v14 = vld [vmem:[%s1297_s15 + $0x18] sm:$0xff]  ;;  %v1329_v17 = vld [vmem:[%s1297_s15 + $0xa8] sm:$0xff]  ;;  %v214_v19 = vld [vmem:[%s1297_s15 + $0x20] sm:$0xff]  ;;  %v904_v21 = vpack.i.bf16 %v212_v7, %v1314_v8  ;;  %p1043_p8 = scmp.ne.s32.totalorder %s558_s4, %s1042_s19  ;;  %p1519_p9 = scmp.ne.s32.totalorder %s1515_s22, 0 }
  0x40   : > { %901 = vxpose.xlu0.b32.start [1/16] %v900_v3, 128  ;;  %781 = vmatprep.subr.bf16.mxu0 %v780_v10  ;;  %v786_v18 = vpack.c.bf16 %v213_v14, %v212_v7  ;;  %v788_v20 = vpack.c.bf16 %v1329_v17, %v1326_v16  ;;  %v215_v23 = vld [vmem:[%s1297_s15 + $0x28] sm:$0xff]  ;;  %v1337_v25 = vld [vmem:[%s1297_s15 + $0xb0] sm:$0xff]  ;;  %v1340_v26 = vld [vmem:[%s1297_s15 + $0xb8] sm:$0xff]  ;;  %v906_v30 = vpack.i.bf16 %v213_v14, %v1317_v9  ;;  %s1162_s20 = smov [#allocation5]  }
  0x41   : > { %v245_v15 = vadd.f32 %v244_v12, %v213_v14  ;;  %783 = vmatpush3.bf16.msra.mxu0 %v782_v6  ;;  %812 = vmatprep.subr.bf16.mxu1 %v780_v10  ;;  %v790_v27 = vpack.c.bf16 %v215_v23, %v214_v19  ;;  %v216_v28 = vld [vmem:[%s1297_s15 + $0x30] sm:$0xff]  ;;  %v792_v29 = vpack.c.bf16 %v1340_v26, %v1337_v25  ;;  %v1347_v32 = vld [vmem:[%s1297_s15 + $0x38] sm:$0xff]  ;;  %v1351_v34 = vld [vmem:[%s1297_s15 + $0xc0] sm:$0xff]  ;;  %p1044_p11 = pnand %p1043_p8, %p1519_p9  ;;  %s1046_s25 = sshll.u32 %s1162_s20, 4  ;;  %s1047_s25 = int_to_ptr.vmem [resolvable:$false] %s1046_s25 }
  0x42   : > { %785 = vmatprep.subr.bf16.mxu0 %v784_v13  ;;  %820 = vmatpush3.bf16.msra.mxu1 %v782_v6  ;;  %v1354_v35 = vld [vmem:[%s1297_s15 + $0xc8] sm:$0xff]  ;;  %v794_v36 = vpack.c.bf16 %v1347_v32, %v216_v28  ;;  %v1358_v37 = vld [vmem:[%s1297_s15 + $0x40] sm:$0xff]  ;;  %v908_v39 = vpack.i.bf16 %v214_v19, %v1326_v16  ;;  %v1366_v43 = vld [vmem:[%s1297_s15 + $0xd0] sm:$0xff]  ;;  %v910_v48 = vpack.i.bf16 %v215_v23, %v1329_v17  ;;  %s1048_s26 = scalar_lea.vmem %s1047_s25, 32  ;;  %p1049_p6 = scmp.lt.s32.totalorder %s558_s4, %s1047_s25 }
  0x43   : > { %v246_v22 = vadd.f32 %v245_v15, %v214_v19  ;;  %813 = vmatprep.subr.bf16.mxu1 %v784_v13  ;;  %v796_v38 = vpack.c.bf16 %v1354_v35, %v1351_v34  ;;  %v219_v41 = vld [vmem:[%s1297_s15 + $0x48] sm:$0xff]  ;;  %v1369_v44 = vld [vmem:[%s1297_s15 + $0xd8] sm:$0xff]  ;;  %v220_v46 = vld [vmem:[%s1297_s15 + $0x50] sm:$0xff]  ;;  %v912_v57 = vpack.i.bf16 %v216_v28, %v1337_v25  ;;  %v914_v3 = vpack.i.bf16 %v1347_v32, %v1340_v26  ;;  %p1045_p0 = pneg %p1044_p11  ;;  %p1050_p13 = scmp.lt.s32.totalorder %s1048_s26, %s1042_s19 }
  0x44   : > { %903 = vxpose.xlu0.b32.cont [2/16] %v902_v11, 128  ;;  %v798_v45 = vpack.c.bf16 %v219_v41, %v1358_v37  ;;  %v800_v47 = vpack.c.bf16 %v1369_v44, %v1366_v43  ;;  %v221_v50 = vld [vmem:[%s1297_s15 + $0x58] sm:$0xff]  ;;  %v238_v52 = vld [vmem:[%s1297_s15 + $0xe0] sm:$0xff]  ;;  %v239_v53 = vld [vmem:[%s1297_s15 + $0xe8] sm:$0xff]  ;;  %v916_v11 = vpack.i.bf16 %v1358_v37, %v1351_v34  ;;  %v918_v14 = vpack.i.bf16 %v219_v41, %v1354_v35 }
  0x45   : > { %v247_v24 = vadd.f32 %v246_v22, %v215_v23  ;;  %787 = vmatpush3.bf16.msra.mxu0 %v786_v18  ;;  %v802_v54 = vpack.c.bf16 %v221_v50, %v220_v46  ;;  %v222_v55 = vld [vmem:[%s1297_s15 + $0x60] sm:$0xff]  ;;  %v804_v56 = vpack.c.bf16 %v239_v53, %v238_v52  ;;  %v223_v59 = vld [vmem:[%s1297_s15 + $0x68] sm:$0xff]  ;;  %v240_v61 = vld [vmem:[%s1297_s15 + $0xf0] sm:$0xff]  ;;  %v920_v19 = vpack.i.bf16 %v220_v46, %v1366_v43  ;;  %p1051_p2 = por %p1050_p13, %p1049_p6 }
  0x46   : > { %789 = vmatprep.subr.bf16.mxu0 %v788_v20  ;;  %821 = vmatpush3.bf16.msra.mxu1 %v786_v18  ;;  %v241_v62 = vld [vmem:[%s1297_s15 + $0xf8] sm:$0xff]  ;;  %v806_v63 = vpack.c.bf16 %v223_v59, %v222_v55  ;;  %v224_v0 = vld [vmem:[%s1297_s15 + $0x70] sm:$0xff]  ;;  %v924_v23 = vpack.i.bf16 %v222_v55, %v238_v52 }
  0x47   : > { %v248_v31 = vadd.f32 %v247_v24, %v216_v28  ;;  %814 = vmatprep.subr.bf16.mxu1 %v788_v20  ;;  %v808_v2 = vpack.c.bf16 %v241_v62, %v240_v61  ;;  %v225_v6 = vld [vmem:[%s1297_s15 + $0x78] sm:$0xff]  ;;  %v926_v24 = vpack.i.bf16 %v223_v59, %v239_v53  ;;  %p1052_p5 = pnand %p1051_p2, %p1045_p0 }
  0x48   : > { %905 = vxpose.xlu0.b32.cont [3/16] %v904_v21, 128  ;;  %v810_v10 = vpack.c.bf16 %v225_v6, %v224_v0 }
  0x49   : > { %v249_v33 = vadd.f32 %v248_v31, %v1347_v32  ;;  %791 = vmatpush3.bf16.msra.mxu0 %v790_v27 }
  0x4a   : > { %793 = vmatprep.subr.bf16.mxu0 %v792_v29  ;;  %822 = vmatpush3.bf16.msra.mxu1 %v790_v27 }
  0x4b   : > { %v250_v40 = vadd.f32 %v249_v33, %v1358_v37  ;;  %815 = vmatprep.subr.bf16.mxu1 %v792_v29 }
  0x4c   : > { %907 = vxpose.xlu0.b32.cont [4/16] %v906_v30, 128 }
  0x4d   : > { %v251_v42 = vadd.f32 %v250_v40, %v219_v41  ;;  %795 = vmatpush3.bf16.msra.mxu0 %v794_v36 }
  0x4e   : > { %797 = vmatprep.subr.bf16.mxu0 %v796_v38  ;;  %823 = vmatpush3.bf16.msra.mxu1 %v794_v36 }
  0x4f   : > { %v252_v49 = vadd.f32 %v251_v42, %v220_v46  ;;  %816 = vmatprep.subr.bf16.mxu1 %v796_v38 }
  0x50   : > { %909 = vxpose.xlu0.b32.cont [5/16] %v908_v39, 128 }
  0x51   : > { %v253_v51 = vadd.f32 %v252_v49, %v221_v50  ;;  %799 = vmatpush3.bf16.msra.mxu0 %v798_v45 }
  0x52   : > { %801 = vmatprep.subr.bf16.mxu0 %v800_v47  ;;  %824 = vmatpush3.bf16.msra.mxu1 %v798_v45 }
  0x53   : > { %v254_v58 = vadd.f32 %v253_v51, %v222_v55  ;;  %817 = vmatprep.subr.bf16.mxu1 %v800_v47 }
  0x54   : > { %911 = vxpose.xlu0.b32.cont [6/16] %v910_v48, 128 }
  0x55   : > { %v255_v60 = vadd.f32 %v254_v58, %v223_v59  ;;  %803 = vmatpush3.bf16.msra.mxu0 %v802_v54 }
  0x56   : > { %805 = vmatprep.subr.bf16.mxu0 %v804_v56  ;;  %825 = vmatpush3.bf16.msra.mxu1 %v802_v54 }
  0x57   : > { %v256_v5 = vadd.f32 %v255_v60, %v224_v0  ;;  %818 = vmatprep.subr.bf16.mxu1 %v804_v56 }
  0x58   : > { %913 = vxpose.xlu0.b32.cont [7/16] %v912_v57, 128 }
  0x59   : > { %v257_v7 = vadd.f32 %v256_v5, %v225_v6  ;;  %807 = vmatpush3.bf16.msra.mxu0 %v806_v63 }
  0x5a   : > { %809 = vmatprep.subr.bf16.mxu0 %v808_v2  ;;  %826 = vmatpush3.bf16.msra.mxu1 %v806_v63 }
  0x5b   : > { %v258_v12 = vadd.f32 %v257_v7, %v1305_v1  ;;  %819 = vmatprep.subr.bf16.mxu1 %v808_v2  ;;  %v922_v1 = vpack.i.bf16 %v221_v50, %v1369_v44 }
  0x5c   : > { %915 = vxpose.xlu0.b32.cont [8/16] %v914_v3, 128 }
  0x5d   : > { %v259_v13 = vadd.f32 %v258_v12, %v1310_v4  ;;  %811 = vmatpush3.bf16.msra.mxu0 %v810_v10 }
  0x5e   : > { %827 = vmatpush3.bf16.msra.mxu1 %v810_v10 }
  0x5f   : > { %v260_v15 = vadd.f32 %v259_v13, %v1314_v8 }
  0x60   : > { %917 = vxpose.xlu0.b32.cont [9/16] %v916_v11, 128 }
  0x61   : > { %v261_v18 = vadd.f32 %v260_v15, %v1317_v9 }
  0x63   : > { %v262_v20 = vadd.f32 %v261_v18, %v1326_v16 }
  0x64   : > { %919 = vxpose.xlu0.b32.cont [10/16] %v918_v14, 128 }
  0x65   : > { %v263_v21 = vadd.f32 %v262_v20, %v1329_v17  ;;  %v928_v17 = vpack.i.bf16 %v224_v0, %v240_v61 }
  0x67   : > { %v264_v4 = vadd.f32 %v263_v21, %v1337_v25  ;;  %v930_v25 = vpack.i.bf16 %v225_v6, %v241_v62 }
  0x68   : > { %921 = vxpose.xlu0.b32.cont [11/16] %v920_v19, 128 }
  0x69   : > { %v265_v22 = vadd.f32 %v264_v4, %v1340_v26 }
  0x6b   : > { %v266_v8 = vadd.f32 %v265_v22, %v1351_v34 }
  0x6c   : > { %923 = vxpose.xlu0.b32.cont [12/16] %v922_v1, 128 }
  0x6d   : > { %v267_v9 = vadd.f32 %v266_v8, %v1354_v35  ;;  %v1161_v8 = vmov 0.0  }
  0x6e   : > { %193 = vst [vmem:[%s180_s21] sm:$0x1] %v1161_v8 }
  0x6f   : > { %v268_v27 = vadd.f32 %v267_v9, %v1366_v43 }
  0x70   : > { %925 = vxpose.xlu0.b32.cont [13/16] %v924_v23, 128 }
  0x71   : > { %v269_v16 = vadd.f32 %v268_v27, %v1369_v44 }
  0x73   : > { %v270_v28 = vadd.f32 %v269_v16, %v238_v52 }
  0x74   : > { %927 = vxpose.xlu0.b32.cont [14/16] %v926_v24, 128 }
  0x75   : > { %v271_v29 = vadd.f32 %v270_v28, %v239_v53  ;;  %v242_v24 = vld [vmem:[%s180_s21] sm:$0x1] }
  0x77   : > { %v272_v30 = vadd.f32 %v271_v29, %v240_v61 }
  0x78   : > { %929 = vxpose.xlu0.b32.cont [15/16] %v928_v17, 128 }
  0x79   : > { %v1405_v26 = vadd.f32 %v272_v30, %v241_v62 }
  0x7b   : > { %v274_v21 = vrot.slane %v1405_v26, 4 }
  0x7c   : > { %931 = vxpose.xlu0.b32.end [16/16] %v930_v25, 128 }
  0x7d   : > { %v275_v1 = vadd.f32 %v274_v21, %v1405_v26 }
  0x7f   : > { %v276_v4 = vrot.slane %v275_v1, 2 }
  0x81   : > { %v277_v22 = vadd.f32 %v276_v4, %v275_v1 }
  0x83   : > { %v278_v23 = vrot.slane %v277_v22, 1 }
  0x85   : > { %v279_v9 = vadd.f32 %v278_v23, %v277_v22 }
  0x87   : > { %v280_v27 = vadd.f32 %v279_v9, %v242_v24 }
  0x89   : > { %281 = vst [vmem:[%s180_s21] sm:$0x1] %v280_v27 }
  0xc0   : > { %v932_v31 = vpop.trf.xlu0 }
  0xc1   : > { %v933_v32 = vunpack.i.l.bf16 %v932_v31  ;;  %v936_v33 = vunpack.i.h.bf16 %v932_v31 }
  0xc3   : > { %426 = vmatprep.mubr.f32.mxu0 %v933_v32 }
  0xc4   : > { %v937_v34 = vpop.trf.xlu0  ;;  %427 = vmatmul.mubr.f32.vlgmr.msra.gmra.mrb[0].mxu0 %v936_v33 }
  0xc5   : > { %v938_v35 = vunpack.i.l.bf16 %v937_v34  ;;  %v941_v36 = vunpack.i.h.bf16 %v937_v34 }
  0xc7   : > { %431 = vmatprep.mubr.f32.mxu0 %v938_v35 }
  0xc8   : > { %v942_v37 = vpop.trf.xlu0  ;;  %432 = vmatmul.mubr.f32.gmra.mrb[2].mxu0 %v941_v36 }
  0xc9   : > { %v943_v38 = vunpack.i.l.bf16 %v942_v37  ;;  %v946_v39 = vunpack.i.h.bf16 %v942_v37 }
  0xcb   : > { %436 = vmatprep.mubr.f32.mxu0 %v943_v38 }
  0xcc   : > { %v947_v40 = vpop.trf.xlu0  ;;  %437 = vmatmul.mubr.f32.gmra.mrb[4].mxu0 %v946_v39 }
  0xcd   : > { %v948_v41 = vunpack.i.l.bf16 %v947_v40  ;;  %v951_v42 = vunpack.i.h.bf16 %v947_v40 }
  0xcf   : > { %441 = vmatprep.mubr.f32.mxu0 %v948_v41 }
  0xd0   : > { %v952_v43 = vpop.trf.xlu0  ;;  %442 = vmatmul.mubr.f32.gmra.mrb[6].mxu0 %v951_v42 }
  0xd1   : > { %v953_v44 = vunpack.i.l.bf16 %v952_v43  ;;  %v956_v45 = vunpack.i.h.bf16 %v952_v43 }
  0xd3   : > { %446 = vmatprep.mubr.f32.mxu0 %v953_v44 }
  0xd4   : > { %v957_v46 = vpop.trf.xlu0  ;;  %447 = vmatmul.mubr.f32.gmra.mrb[8].mxu0 %v956_v45 }
  0xd5   : > { %v958_v47 = vunpack.i.l.bf16 %v957_v46  ;;  %v961_v48 = vunpack.i.h.bf16 %v957_v46 }
  0xd7   : > { %451 = vmatprep.mubr.f32.mxu0 %v958_v47 }
  0xd8   : > { %v962_v49 = vpop.trf.xlu0  ;;  %452 = vmatmul.mubr.f32.gmra.mrb[10].mxu0 %v961_v48 }
  0xd9   : > { %v963_v50 = vunpack.i.l.bf16 %v962_v49  ;;  %v966_v51 = vunpack.i.h.bf16 %v962_v49 }
  0xdb   : > { %456 = vmatprep.mubr.f32.mxu0 %v963_v50 }
  0xdc   : > { %v967_v52 = vpop.trf.xlu0  ;;  %457 = vmatmul.mubr.f32.gmra.mrb[12].mxu0 %v966_v51 }
  0xdd   : > { %v968_v53 = vunpack.i.l.bf16 %v967_v52  ;;  %v971_v54 = vunpack.i.h.bf16 %v967_v52 }
  0xdf   : > { %461 = vmatprep.mubr.f32.mxu0 %v968_v53 }
  0xe0   : > { %v972_v55 = vpop.trf.xlu0  ;;  %462 = vmatmul.mubr.f32.gmra.mrb[14].mxu0 %v971_v54 }
  0xe1   : > { %v973_v56 = vunpack.i.l.bf16 %v972_v55  ;;  %v976_v57 = vunpack.i.h.bf16 %v972_v55 }
  0xe3   : > { %466 = vmatprep.mubr.f32.mxu1 %v973_v56 }
  0xe4   : > { %v977_v58 = vpop.trf.xlu0  ;;  %467 = vmatmul.mubr.f32.vlgmr.msra.gmra.mrb[0].mxu1 %v976_v57 }
  0xe5   : > { %v978_v59 = vunpack.i.l.bf16 %v977_v58  ;;  %v981_v60 = vunpack.i.h.bf16 %v977_v58 }
  0xe7   : > { %471 = vmatprep.mubr.f32.mxu1 %v978_v59 }
  0xe8   : > { %v982_v61 = vpop.trf.xlu0  ;;  %472 = vmatmul.mubr.f32.gmra.mrb[2].mxu1 %v981_v60 }
  0xe9   : > { %v983_v62 = vunpack.i.l.bf16 %v982_v61  ;;  %v986_v63 = vunpack.i.h.bf16 %v982_v61 }
  0xeb   : > { %476 = vmatprep.mubr.f32.mxu1 %v983_v62 }
  0xec   : > { %v987_v0 = vpop.trf.xlu0  ;;  %477 = vmatmul.mubr.f32.gmra.mrb[4].mxu1 %v986_v63 }
  0xed   : > { %v988_v2 = vunpack.i.l.bf16 %v987_v0  ;;  %v991_v3 = vunpack.i.h.bf16 %v987_v0 }
  0xef   : > { %481 = vmatprep.mubr.f32.mxu1 %v988_v2 }
  0xf0   : > { %v992_v5 = vpop.trf.xlu0  ;;  %482 = vmatmul.mubr.f32.gmra.mrb[6].mxu1 %v991_v3 }
  0xf1   : > { %v993_v6 = vunpack.i.l.bf16 %v992_v5  ;;  %v996_v7 = vunpack.i.h.bf16 %v992_v5 }
  0xf3   : > { %486 = vmatprep.mubr.f32.mxu1 %v993_v6 }
  0xf4   : > { %v997_v10 = vpop.trf.xlu0  ;;  %487 = vmatmul.mubr.f32.gmra.mrb[8].mxu1 %v996_v7 }
  0xf5   : > { %v998_v11 = vunpack.i.l.bf16 %v997_v10  ;;  %v1001_v12 = vunpack.i.h.bf16 %v997_v10 }
  0xf7   : > { %491 = vmatprep.mubr.f32.mxu1 %v998_v11 }
  0xf8   : > { %v1002_v13 = vpop.trf.xlu0  ;;  %492 = vmatmul.mubr.f32.gmra.mrb[10].mxu1 %v1001_v12 }
  0xf9   : > { %v1003_v14 = vunpack.i.l.bf16 %v1002_v13  ;;  %v1006_v15 = vunpack.i.h.bf16 %v1002_v13 }
  0xfb   : > { %496 = vmatprep.mubr.f32.mxu1 %v1003_v14 }
  0xfc   : > { %v1007_v18 = vpop.trf.xlu0  ;;  %497 = vmatmul.mubr.f32.gmra.mrb[12].mxu1 %v1006_v15 }
  0xfd   : > { %v1011_v19 = vunpack.i.h.bf16 %v1007_v18  ;;  %v1008_v20 = vunpack.i.l.bf16 %v1007_v18 }
  0xff   : > { %501 = vmatprep.mubr.f32.mxu1 %v1008_v20 }
 0x100   : > { %502 = vmatmul.mubr.f32.gmra.mrb[14].mxu1 %v1011_v19 }
 0x101   : > { %1055 = shalt.err (!%p1052_p5)
}
 0x102   : > { %s1056_s27 = scalar_lea.hbm %s1414_s16, 16  ;;  %s1060_s7 = scalar_lea.hbm %s1510_s1, 32 }
 0x103   : > { %p1057_p4 = scmp.ne.s32.totalorder %s1414_s16, %s1056_s27  ;;  %p1061_p12 = scmp.lt.u32.totalorder %s1414_s16, %s1510_s1 }
 0x104   : > { %p1062_p1 = scmp.lt.u32.totalorder %s1060_s7, %s1056_s27  ;;  %p1064_p8 = scmp.lt.u32.totalorder %s1056_s27, %s1414_s16 }
 0x105   : > { %p1058_p7 = pnand %p1057_p4, %p1519_p9 }
 0x106   : > { %p1063_p3 = por %p1062_p1, %p1061_p12 }
 0x107   : > { %p1059_p10 = pneg %p1058_p7 }
 0x108   : > { %p1065_p11 = por %p1064_p8, %p1063_p3 }
 0x10a   : > { %p1066_p0 = pnand %p1065_p11, %p1059_p10 }
 0x10c   : > { %1069 = shalt.err (!%p1066_p0)
}
 0x10d   : > { %830 = dma.vmem_to_hbm [thread:$0]  (%p1519_p9), %s558_s4, 16, %s1414_s16, %s540_s18  }
 0x10e   : > { %s691_s21 = sshll.u32 %s1293_s3, 7  ;;  %s699_s4 = sshll.u32 %s1148_s12, 11 }
 0x10f   : > { %s1435_s30 = scalar_lea.vmem [#allocation6], %s691_s21  ;;  %s1457_s18 = scalar_lea.hbm %s1511_s2, %s699_s4 }
 0x110   : > { %s570_s5 = sshll.u32 %s1435_s30, 4  ;;  %s544_s19 = scalar_lea.sflag [#allocation7], %s1293_s3  ;;  %s1459_s5 = int_to_ptr.vmem [resolvable:$true] %s570_s5 }
 0x111   : > { %s1070_s20 = scalar_lea.vmem %s1459_s5, 2048  ;;  %s1163_s12 = smov [#allocation6]  }
 0x112   : > { %p1071_p6 = scmp.ne.s32.totalorder %s1459_s5, %s1070_s20  ;;  %s1074_s25 = sshll.u32 %s1163_s12, 4  ;;  %s1075_s25 = int_to_ptr.vmem [resolvable:$false] %s1074_s25 }
 0x113   : > { %s1076_s26 = scalar_lea.vmem %s1075_s25, 4096  ;;  %p1077_p5 = scmp.lt.s32.totalorder %s1459_s5, %s1075_s25 }
 0x114   : > { %p1072_p13 = pnand %p1071_p6, %p1519_p9  ;;  %p1078_p4 = scmp.lt.s32.totalorder %s1076_s26, %s1070_s20 }
 0x116   : > { %p1073_p2 = pneg %p1072_p13  ;;  %p1079_p7 = por %p1078_p4, %p1077_p5 }
 0x118   : > { %p1080_p10 = pnand %p1079_p7, %p1073_p2 }
 0x197   : > { %v732_v16 = vpop.f32.mrb[0].mxu0 }
 0x198   : > { %v733_v17 = vpop.f32.mrb[1].mxu0 }
 0x199   : > { %v734_v28 = vadd.f32 %v733_v17, %v732_v16 }
 0x19b   : > { %v735_v29 = vpop.f32.mrb[2].mxu0  ;;  %523 = vst [vmem:[%s1435_s30] sm:$0xff] %v734_v28 }
 0x19c   : > { %v736_v25 = vpop.f32.mrb[3].mxu0 }
 0x19d   : > { %v737_v30 = vadd.f32 %v736_v25, %v735_v29 }
 0x19f   : > { %v738_v26 = vpop.f32.mrb[4].mxu0  ;;  %524 = vst [vmem:[%s1435_s30 + $0x8] sm:$0xff] %v737_v30 }
 0x1a0   : > { %v739_v31 = vpop.f32.mrb[5].mxu0 }
 0x1a1   : > { %v740_v32 = vadd.f32 %v739_v31, %v738_v26 }
 0x1a3   : > { %v741_v33 = vpop.f32.mrb[6].mxu0  ;;  %525 = vst [vmem:[%s1435_s30 + $0x10] sm:$0xff] %v740_v32 }
 0x1a4   : > { %v742_v34 = vpop.f32.mrb[7].mxu0 }
 0x1a5   : > { %v743_v35 = vadd.f32 %v742_v34, %v741_v33 }
 0x1a7   : > { %v744_v36 = vpop.f32.mrb[8].mxu0  ;;  %526 = vst [vmem:[%s1435_s30 + $0x18] sm:$0xff] %v743_v35 }
 0x1a8   : > { %v745_v37 = vpop.f32.mrb[9].mxu0 }
 0x1a9   : > { %v746_v38 = vadd.f32 %v745_v37, %v744_v36 }
 0x1ab   : > { %v747_v39 = vpop.f32.mrb[10].mxu0  ;;  %527 = vst [vmem:[%s1435_s30 + $0x20] sm:$0xff] %v746_v38 }
 0x1ac   : > { %v748_v40 = vpop.f32.mrb[11].mxu0 }
 0x1ad   : > { %v749_v41 = vadd.f32 %v748_v40, %v747_v39 }
 0x1af   : > { %v750_v42 = vpop.f32.mrb[12].mxu0  ;;  %528 = vst [vmem:[%s1435_s30 + $0x28] sm:$0xff] %v749_v41 }
 0x1b0   : > { %v751_v43 = vpop.f32.mrb[13].mxu0 }
 0x1b1   : > { %v752_v44 = vadd.f32 %v751_v43, %v750_v42 }
 0x1b3   : > { %v753_v45 = vpop.f32.mrb[14].mxu0  ;;  %529 = vst [vmem:[%s1435_s30 + $0x30] sm:$0xff] %v752_v44 }
 0x1b4   : > { %v754_v46 = vpop.f32.mrb[15].mxu0 }
 0x1b5   : > { %v755_v47 = vadd.f32 %v754_v46, %v753_v45 }
 0x1b7   : > { %v756_v48 = vpop.f32.mrb[0].mxu1  ;;  %530 = vst [vmem:[%s1435_s30 + $0x38] sm:$0xff] %v755_v47 }
 0x1b8   : > { %v757_v49 = vpop.f32.mrb[1].mxu1 }
 0x1b9   : > { %v758_v50 = vadd.f32 %v757_v49, %v756_v48 }
 0x1bb   : > { %v759_v51 = vpop.f32.mrb[2].mxu1  ;;  %531 = vst [vmem:[%s1435_s30 + $0x40] sm:$0xff] %v758_v50 }
 0x1bc   : > { %v760_v52 = vpop.f32.mrb[3].mxu1 }
 0x1bd   : > { %v761_v53 = vadd.f32 %v760_v52, %v759_v51 }
 0x1bf   : > { %v762_v54 = vpop.f32.mrb[4].mxu1  ;;  %532 = vst [vmem:[%s1435_s30 + $0x48] sm:$0xff] %v761_v53 }
 0x1c0   : > { %v763_v55 = vpop.f32.mrb[5].mxu1 }
 0x1c1   : > { %v764_v56 = vadd.f32 %v763_v55, %v762_v54 }
 0x1c3   : > { %v765_v57 = vpop.f32.mrb[6].mxu1  ;;  %533 = vst [vmem:[%s1435_s30 + $0x50] sm:$0xff] %v764_v56 }
 0x1c4   : > { %v766_v58 = vpop.f32.mrb[7].mxu1 }
 0x1c5   : > { %v767_v59 = vadd.f32 %v766_v58, %v765_v57 }
 0x1c7   : > { %v768_v60 = vpop.f32.mrb[8].mxu1  ;;  %534 = vst [vmem:[%s1435_s30 + $0x58] sm:$0xff] %v767_v59 }
 0x1c8   : > { %v769_v61 = vpop.f32.mrb[9].mxu1 }
 0x1c9   : > { %v770_v62 = vadd.f32 %v769_v61, %v768_v60 }
 0x1cb   : > { %v771_v63 = vpop.f32.mrb[10].mxu1  ;;  %535 = vst [vmem:[%s1435_s30 + $0x60] sm:$0xff] %v770_v62 }
 0x1cc   : > { %v772_v0 = vpop.f32.mrb[11].mxu1 }
 0x1cd   : > { %v773_v2 = vadd.f32 %v772_v0, %v771_v63 }
 0x1cf   : > { %v774_v3 = vpop.f32.mrb[12].mxu1  ;;  %536 = vst [vmem:[%s1435_s30 + $0x68] sm:$0xff] %v773_v2 }
 0x1d0   : > { %v775_v5 = vpop.f32.mrb[13].mxu1 }
 0x1d1   : > { %v776_v6 = vadd.f32 %v775_v5, %v774_v3 }
 0x1d3   : > { %v777_v7 = vpop.f32.mrb[14].mxu1  ;;  %537 = vst [vmem:[%s1435_s30 + $0x70] sm:$0xff] %v776_v6 }
 0x1d4   : > { %v778_v10 = vpop.f32.mrb[15].mxu1 }
 0x1d5   : > { %v779_v11 = vadd.f32 %v778_v10, %v777_v7 }
 0x1d7   : > { %538 = vst [vmem:[%s1435_s30 + $0x78] sm:$0xff] %v779_v11 }
 0x1d8   : > { %1083 = shalt.err (!%p1080_p10)
}
 0x1d9   : > { %s1084_s27 = scalar_lea.hbm %s1457_s18, 2048  ;;  %s1088_s7 = scalar_lea.hbm %s1511_s2, 4096 }
 0x1da   : > { %p1085_p12 = scmp.ne.s32.totalorder %s1457_s18, %s1084_s27  ;;  %p1089_p8 = scmp.lt.u32.totalorder %s1457_s18, %s1511_s2 }
 0x1db   : > { %p1090_p11 = scmp.lt.u32.totalorder %s1088_s7, %s1084_s27  ;;  %p1092_p6 = scmp.lt.u32.totalorder %s1084_s27, %s1457_s18 }
 0x1dc   : > { %p1086_p1 = pnand %p1085_p12, %p1519_p9 }
 0x1dd   : > { %p1091_p0 = por %p1090_p11, %p1089_p8 }
 0x1de   : > { %p1087_p3 = pneg %p1086_p1 }
 0x1df   : > { %p1093_p13 = por %p1092_p6, %p1091_p0 }
 0x1e1   : > { %p1094_p2 = pnand %p1093_p13, %p1087_p3 }
 0x1e3   : > { %1097 = shalt.err (!%p1094_p2)
}
 0x1e4   : > { %s1164_s21 = smov 128   ;;  %s1165_s30 = smov 8  }
 0x1e5   : > { %831 = dma.vmem_to_hbm [thread:$0]  (%p1519_p9), %s1459_s5, 2048, %s1457_s18, %s544_s19, %s1164_s21, %s1164_s21, %s1165_s30  }
 0x1e6 PF: > { %s585_s4 = sand.u32 1, %s1136_s9   ;;  %p1520_p5 = scmp.ne.s32.totalorder %s1516_s24, 0 }
 0x1e7   : > { %p1521_p4 = scmp.ge.s32.totalorder %s1156_s14, 2  ;;  %s586_s6 = scalar_lea.sflag [#allocation4], %s585_s4 }
 0x1e9   : > { %p839_p7 = pnand %p1521_p4, %p1520_p5 }
 0x1eb   : > { %1127 = dma.done.wait (!%p839_p7), %s586_s6, 16  }
 0x1ec   : > { %1129 = vsyncadd (!%p839_p7), %s586_s6, 4294967280  ;;  %s594_s16 = scalar_lea.sflag [#allocation7], %s585_s4 }
 0x1ed   : > { %1131 = dma.done.wait (!%p839_p7), %s594_s16, 2048  }
 0x1ee   : > { %1133 = vsyncadd (!%p839_p7), %s594_s16, 4294965248  ;;  %s22_s14 = sadd.s32 1, %s1156_s14   ;;  %s1522_s9 = smov %s1140_s10 }
 0x1ef   : > { %p19_p10 = scmp.ge.s32.totalorder %s22_s14, 4   ;;  %s1523_s10 = smov %s1144_s11 }
 0x1f0   : > { %s1524_s11 = smov %s1237_s23  ;;  %s1525_s12 = smov %s1152_s13 }
 0x1f1   : > { %s1526_s13 = smov %s1528_s17  ;;  %21 = sbr.rel (!%p19_p10) target bundleno = 8 (0x8), region = 90 }
 0x1f8   :  { %599 = vsyncpa [#allocation3], 1 }
 0x1f9   :  { %601 = vsyncpa [#allocation3 + $0x1], 1 }
 0x1fa   :  { %602 = vsyncpa [#allocation4], 1 }
 0x1fb   :  { %604 = vsyncpa [#allocation4 + $0x1], 1 }
 0x1fc   :  { %605 = vsyncpa [#allocation7], 1 }
 0x1fd   :  { %607 = vsyncpa [#allocation7 + $0x1], 1 }

</bundles_post_ra>
